<compile_context>
chip_gen: v6e
topology: v6e:2x2x1
jax: 0.10.0
libtpu: 0.0.40
codegen_flags: <defaults>
</compile_context>

<pallas_src>
import functools

import jax
import jax.numpy as jnp
from jax.experimental import pallas as pl
from jax.experimental.pallas import tpu as pltpu

FMIN = 1e-3  # module default fmin=0.001


def _flux_forward_kernel(param_ref, bg_ref, basis_ref, out_ref, *,
                         fmin, bt, n_stars, n_bands, hw):
    # param_ref: (B_pad, S*C)    whole array, fetched once (constant index_map)
    # bg_ref:    (1, C*HW)       planar background, fetched once
    # basis_ref: (bt, S*C*HW)    this block's star-basis rows (lane-dense)
    # out_ref:   (bt, C*HW)      recon_mean rows for this block
    i0 = pl.multiple_of(pl.program_id(0) * bt, bt)

    # fluxes = exp(param) + fmin for this block's rows (tiny: bt x S*C, one
    # EUP pass per block instead of one per (s, c) term).
    flux = jnp.exp(param_ref[pl.ds(i0, bt), :]) + fmin          # (bt, S*C)

    for c in range(n_bands):
        lo = c * hw
        acc = jnp.zeros((bt, hw), jnp.float32)
        # Unrolled FMA chain over stars: the (bt, S, C, HW) product never
        # materializes in VMEM (no extra vst+vld pass over the block).
        for s in range(n_stars):
            k = s * n_bands + c
            acc = acc + flux[:, k:k + 1] * basis_ref[:, k * hw:(k + 1) * hw]
        # Lane-dense (width = HW, multiple of 128 here) unmasked stores.
        out_ref[:, lo:lo + hw] = jnp.maximum(acc + bg_ref[:, lo:lo + hw], 1e-6)


def _choose_batch_tile(B, bytes_per_row, target_bytes=4 << 20,
                       min_bytes=1 << 20, min_steps=4):
    """How many batch rows go into one block.

    Targets ~1-4 MB basis blocks (big enough that the ~0.35 us per-step fixed
    cost and DMA descriptors vanish, small enough that double-buffered blocks
    fit v7x's 64 MiB VMEM with headroom), keeps the block's second-minor dim
    8-aligned when it is not the full batch, and prefers >= min_steps grid
    steps so the "parallel" batch axis can shard across both v7x TensorCores
    -- but never shrinks blocks below ~min_bytes (overhead would dominate).
    """
    if B * bytes_per_row <= target_bytes and B < 8 * min_steps:
        return B                                    # small problem: one block
    bt = max(8, min(B, max(1, target_bytes // bytes_per_row)) // 8 * 8)
    cap = max(8, (pl.cdiv(B, min_steps) // 8) * 8)  # >= min_steps grid steps
    if cap * bytes_per_row >= min_bytes:
        bt = min(bt, cap)
    return min(bt, B)


def flux_estimator_forward(param, star_basis, bg_params, fmin=FMIN):
    """Pallas implementation of FluxEstimator.forward().

    param:      (B, S, C)        float32  (nn.Parameter `self.param`)
    star_basis: (B, S, C, H, W)  float32  (already masked by is_on_array)
    bg_params:  (C, 3)           float32  (planar background params)
    returns:    (B, C, H, W)     float32  recon_mean
    """
    B, S, C = param.shape
    slen = star_basis.shape[-1]
    HW = slen * slen
    K = S * C * HW

    param = param.astype(jnp.float32)
    star_basis = star_basis.astype(jnp.float32)
    bg_params = bg_params.astype(jnp.float32)

    # Row-major flattens only (logical order preserved).
    basis2d = star_basis.reshape(B, K)          # (B, S*C*HW), lane-dense rows
    param2d = param.reshape(B, S * C)           # (B, S*C), tiny

    # PlanarBackground.forward(): p0 + p1*x + p2*y on an 'xy' meshgrid of
    # linspace(-1, 1, slen).  Grid-invariant and tiny -> compute once here.
    # TODO(synk): confirm original PlanarBackground meshgrid convention
    # ('xy' vs 'ij'); wrapper and reference below use the same one.
    lin = jnp.linspace(-1.0, 1.0, slen, dtype=jnp.float32)
    xg, yg = jnp.meshgrid(lin, lin)             # 'xy': x varies along W
    bg = (bg_params[:, 0][:, None, None]
          + bg_params[:, 1][:, None, None] * xg
          + bg_params[:, 2][:, None, None] * yg)
    bg2d = bg.reshape(1, C * HW).astype(jnp.float32)

    bytes_per_row = K * 4
    bt = _choose_batch_tile(B, bytes_per_row)
    n_blocks = pl.cdiv(B, bt)

    # param is indexed manually inside the kernel (whole-array block fetched
    # once); pad its rows so the last (possibly partial) block never slices
    # out of bounds.  Masked output writes discard the padded rows.
    B_pad = n_blocks * bt
    if B_pad != B:
        param2d = jnp.pad(param2d, ((0, B_pad - B), (0, 0)))

    # Explicit VMEM budget: double-buffered basis + output blocks, plus the
    # once-fetched param/background, plus slack.  Clamped to stay v7x-safe.
    basis_block_bytes = bt * K * 4
    out_block_bytes = bt * C * HW * 4
    vmem_need = (2 * (basis_block_bytes + out_block_bytes)
                 + B_pad * S * C * 4 + C * HW * 4 + (2 << 20))
    vmem_limit = int(min(max(vmem_need, 32 << 20), 48 << 20))

    kernel = functools.partial(_flux_forward_kernel, fmin=fmin, bt=bt,
                               n_stars=S, n_bands=C, hw=HW)

    # TODO(synk): if S or slen grows so one (bt, K) block cannot fit VMEM,
    # add a trailing "arbitrary" grid axis over S with a VMEM accumulator and
    # pl.when init/finalize instead of shrinking the lane-dense K dimension.
    out2d = pl.pallas_call(
        kernel,
        out_shape=jax.ShapeDtypeStruct((B, C * HW), jnp.float32),
        grid=(n_blocks,),
        in_specs=[
            # whole param tensor, constant block index -> DMA'd once
            pl.BlockSpec((B_pad, S * C), lambda b: (0, 0)),
            # whole background, constant block index -> DMA'd once
            pl.BlockSpec((1, C * HW), lambda b: (0, 0)),
            # fat, lane-dense basis block: bt batch rows per grid step
            # (option: pipeline_mode=pl.Buffered(3) if traces show exposed DMA)
            pl.BlockSpec((bt, K), lambda b: (b, 0)),
        ],
        out_specs=pl.BlockSpec((bt, C * HW), lambda b: (b, 0)),
        compiler_params=pltpu.CompilerParams(
            dimension_semantics=("parallel",),
            vmem_limit_bytes=vmem_limit),
    )(param2d, bg2d, basis2d)

    return out2d.reshape(B, C, slen, slen)


def flux_estimator_forward_ref(param, star_basis, bg_params, fmin=FMIN):
    """Pure-JAX reference mirroring the PyTorch forward."""
    slen = star_basis.shape[-1]
    fluxes = jnp.exp(param)[:, :, :, None, None] + fmin
    lin = jnp.linspace(-1.0, 1.0, slen)
    xg, yg = jnp.meshgrid(lin, lin)  # 'xy': x varies along columns
    bg = (bg_params[:, 0][:, None, None]
          + bg_params[:, 1][:, None, None] * xg
          + bg_params[:, 2][:, None, None] * yg)
    recon = (fluxes * star_basis).sum(axis=1) + bg[None]
    return jnp.maximum(recon, 1e-6)


if __name__ == "__main__":
    key = jax.random.PRNGKey(0)
    B, S, C, slen = 2, 6, 2, 16           # batch, max_stars, n_bands, image side
    n_stars = jnp.array([4, 6], dtype=jnp.int32)

    k1, k2 = jax.random.split(key, 2)

    # star locations in [0, 1]^2 (row, col convention as in the module)
    locs = jax.random.uniform(k1, (B, S, 2), minval=0.15, maxval=0.85,
                              dtype=jnp.float32)
    # utils.get_is_on_from_n_stars
    is_on = (jnp.arange(S)[None, :] < n_stars[:, None]).astype(jnp.float32)

    # __init__ glue: render per-star / per-band PSF images (plot_one_star
    # equivalent: a unit-peak Gaussian PSF centered at each location),
    # masked by is_on_array -> self.star_basis of shape (B, S, C, H, W).
    sigmas = jnp.array([1.0, 1.5], dtype=jnp.float32)           # per band
    yy = jnp.arange(slen, dtype=jnp.float32)
    xx = jnp.arange(slen, dtype=jnp.float32)
    cy = locs[:, :, 0] * (slen - 1)                             # (B, S)
    cx = locs[:, :, 1] * (slen - 1)
    dy2 = (yy[None, None, :] - cy[:, :, None]) ** 2             # (B, S, H)
    dx2 = (xx[None, None, :] - cx[:, :, None]) ** 2             # (B, S, W)
    r2 = dy2[:, :, None, :, None] + dx2[:, :, None, None, :]    # (B, S, 1, H, W)
    star_basis = jnp.exp(-0.5 * r2 / (sigmas[None, None, :, None, None] ** 2))
    star_basis = star_basis * is_on[:, :, None, None, None]     # (B, S, C, H, W)

    # planar background parameters: (n_bands, 3) = (offset, x-slope, y-slope)
    bg_params = jnp.array([[150.0, 5.0, -3.0],
                           [200.0, -4.0, 2.0]], dtype=jnp.float32)

    # init_fluxes path of __init__:
    #   init_param = log(init_fluxes.clamp(min=fmin+1) - fmin); param = init_param
    init_fluxes = jax.random.uniform(k2, (B, S, C), minval=50.0, maxval=500.0,
                                     dtype=jnp.float32)
    param = jnp.log(jnp.maximum(init_fluxes, FMIN + 1.0) - FMIN)

    out = flux_estimator_forward(param, star_basis, bg_params)
    out = jax.block_until_ready(out)

    ref = flux_estimator_forward_ref(param, star_basis, bg_params)
    assert out.shape == (B, C, slen, slen)
    assert out.dtype == jnp.float32
    assert jnp.allclose(out, ref, rtol=1e-5, atol=1e-3), \
        float(jnp.max(jnp.abs(out - ref)))

    print("KERNEL_OK")
</pallas_src>

<mosaic_0001>
module attributes {stable_mosaic.version = 11 : i64} {
  func.func @_flux_forward_kernel(%arg0: i32, %arg1: memref<2x12xf32, #tpu.memory_space<vmem>>, %arg2: memref<1x512xf32, #tpu.memory_space<vmem>>, %arg3: memref<2x3072xf32, #tpu.memory_space<vmem>>, %arg4: memref<2x512xf32, #tpu.memory_space<vmem>>) attributes {dimension_semantics = [#tpu.dimension_semantics<parallel>], iteration_bounds = array<i64: 1>, scalar_prefetch = 0 : i64, scratch_operands = 0 : i64, tpu.core_type = #tpu.core_type<tc>, window_params = [{pipeline_mode = #tpu.pipeline_mode<synchronous>, transform_indices = @transform_0, window_bounds = array<i64: 2, 12>}, {pipeline_mode = #tpu.pipeline_mode<synchronous>, transform_indices = @transform_1, window_bounds = array<i64: 1, 512>}, {transform_indices = @transform_2, window_bounds = array<i64: 2, 3072>}, {transform_indices = @transform_3, window_bounds = array<i64: 2, 512>}]} {
    %c2_i32 = arith.constant 2 : i32
    %0 = arith.muli %arg0, %c2_i32 : i32
    %1 = tpu.assume_multiple %0, 2 : i32
    %2 = arith.index_cast %1 : i32 to index
    %c0 = arith.constant 0 : index
    %3 = vector.load %arg1[%2, %c0] : memref<2x12xf32, #tpu.memory_space<vmem>>, vector<2x12xf32>
    %4 = math.exp %3 : vector<2x12xf32>
    %cst = arith.constant 1.000000e-03 : f32
    %5 = vector.broadcast %cst : f32 to vector<2x12xf32>
    %6 = arith.addf %4, %5 : vector<2x12xf32>
    %cst_0 = arith.constant 0.000000e+00 : f32
    %7 = vector.broadcast %cst_0 : f32 to vector<2x256xf32>
    %8 = vector.extract_strided_slice %6 {offsets = [0, 0], sizes = [2, 1], strides = [1, 1]} : vector<2x12xf32> to vector<2x1xf32>
    %c0_1 = arith.constant 0 : index
    %c0_2 = arith.constant 0 : index
    %9 = vector.load %arg3[%c0_1, %c0_2] : memref<2x3072xf32, #tpu.memory_space<vmem>>, vector<2x256xf32>
    %10 = vector.broadcast %8 : vector<2x1xf32> to vector<2x256xf32>
    %11 = arith.mulf %10, %9 : vector<2x256xf32>
    %12 = arith.addf %7, %11 : vector<2x256xf32>
    %13 = vector.extract_strided_slice %6 {offsets = [0, 2], sizes = [2, 1], strides = [1, 1]} : vector<2x12xf32> to vector<2x1xf32>
    %c0_3 = arith.constant 0 : index
    %c512 = arith.constant 512 : index
    %14 = vector.load %arg3[%c0_3, %c512] : memref<2x3072xf32, #tpu.memory_space<vmem>>, vector<2x256xf32>
    %15 = vector.broadcast %13 : vector<2x1xf32> to vector<2x256xf32>
    %16 = arith.mulf %15, %14 : vector<2x256xf32>
    %17 = arith.addf %12, %16 : vector<2x256xf32>
    %18 = vector.extract_strided_slice %6 {offsets = [0, 4], sizes = [2, 1], strides = [1, 1]} : vector<2x12xf32> to vector<2x1xf32>
    %c0_4 = arith.constant 0 : index
    %c1024 = arith.constant 1024 : index
    %19 = vector.load %arg3[%c0_4, %c1024] : memref<2x3072xf32, #tpu.memory_space<vmem>>, vector<2x256xf32>
    %20 = vector.broadcast %18 : vector<2x1xf32> to vector<2x256xf32>
    %21 = arith.mulf %20, %19 : vector<2x256xf32>
    %22 = arith.addf %17, %21 : vector<2x256xf32>
    %23 = vector.extract_strided_slice %6 {offsets = [0, 6], sizes = [2, 1], strides = [1, 1]} : vector<2x12xf32> to vector<2x1xf32>
    %c0_5 = arith.constant 0 : index
    %c1536 = arith.constant 1536 : index
    %24 = vector.load %arg3[%c0_5, %c1536] : memref<2x3072xf32, #tpu.memory_space<vmem>>, vector<2x256xf32>
    %25 = vector.broadcast %23 : vector<2x1xf32> to vector<2x256xf32>
    %26 = arith.mulf %25, %24 : vector<2x256xf32>
    %27 = arith.addf %22, %26 : vector<2x256xf32>
    %28 = vector.extract_strided_slice %6 {offsets = [0, 8], sizes = [2, 1], strides = [1, 1]} : vector<2x12xf32> to vector<2x1xf32>
    %c0_6 = arith.constant 0 : index
    %c2048 = arith.constant 2048 : index
    %29 = vector.load %arg3[%c0_6, %c2048] : memref<2x3072xf32, #tpu.memory_space<vmem>>, vector<2x256xf32>
    %30 = vector.broadcast %28 : vector<2x1xf32> to vector<2x256xf32>
    %31 = arith.mulf %30, %29 : vector<2x256xf32>
    %32 = arith.addf %27, %31 : vector<2x256xf32>
    %33 = vector.extract_strided_slice %6 {offsets = [0, 10], sizes = [2, 1], strides = [1, 1]} : vector<2x12xf32> to vector<2x1xf32>
    %c0_7 = arith.constant 0 : index
    %c2560 = arith.constant 2560 : index
    %34 = vector.load %arg3[%c0_7, %c2560] : memref<2x3072xf32, #tpu.memory_space<vmem>>, vector<2x256xf32>
    %35 = vector.broadcast %33 : vector<2x1xf32> to vector<2x256xf32>
    %36 = arith.mulf %35, %34 : vector<2x256xf32>
    %37 = arith.addf %32, %36 : vector<2x256xf32>
    %c0_8 = arith.constant 0 : index
    %c0_9 = arith.constant 0 : index
    %38 = vector.load %arg2[%c0_8, %c0_9] : memref<1x512xf32, #tpu.memory_space<vmem>>, vector<1x256xf32>
    %39 = vector.broadcast %38 : vector<1x256xf32> to vector<2x256xf32>
    %40 = arith.addf %37, %39 : vector<2x256xf32>
    %cst_10 = arith.constant 9.99999997E-7 : f32
    %41 = vector.broadcast %cst_10 : f32 to vector<2x256xf32>
    %42 = arith.maximumf %40, %41 : vector<2x256xf32>
    %c0_11 = arith.constant 0 : index
    %c0_12 = arith.constant 0 : index
    %43 = vector.load %arg4[%c0_11, %c0_12] : memref<2x512xf32, #tpu.memory_space<vmem>>, vector<2x256xf32>
    tpu.vector_store %arg4[%c0_11, %c0_12], %42 {strides = array<i32>} : memref<2x512xf32, #tpu.memory_space<vmem>>, vector<2x256xf32>,
    %cst_13 = arith.constant 0.000000e+00 : f32
    %44 = vector.broadcast %cst_13 : f32 to vector<2x256xf32>
    %45 = vector.extract_strided_slice %6 {offsets = [0, 1], sizes = [2, 1], strides = [1, 1]} : vector<2x12xf32> to vector<2x1xf32>
    %c0_14 = arith.constant 0 : index
    %c256 = arith.constant 256 : index
    %46 = vector.load %arg3[%c0_14, %c256] : memref<2x3072xf32, #tpu.memory_space<vmem>>, vector<2x256xf32>
    %47 = vector.broadcast %45 : vector<2x1xf32> to vector<2x256xf32>
    %48 = arith.mulf %47, %46 : vector<2x256xf32>
    %49 = arith.addf %44, %48 : vector<2x256xf32>
    %50 = vector.extract_strided_slice %6 {offsets = [0, 3], sizes = [2, 1], strides = [1, 1]} : vector<2x12xf32> to vector<2x1xf32>
    %c0_15 = arith.constant 0 : index
    %c768 = arith.constant 768 : index
    %51 = vector.load %arg3[%c0_15, %c768] : memref<2x3072xf32, #tpu.memory_space<vmem>>, vector<2x256xf32>
    %52 = vector.broadcast %50 : vector<2x1xf32> to vector<2x256xf32>
    %53 = arith.mulf %52, %51 : vector<2x256xf32>
    %54 = arith.addf %49, %53 : vector<2x256xf32>
    %55 = vector.extract_strided_slice %6 {offsets = [0, 5], sizes = [2, 1], strides = [1, 1]} : vector<2x12xf32> to vector<2x1xf32>
    %c0_16 = arith.constant 0 : index
    %c1280 = arith.constant 1280 : index
    %56 = vector.load %arg3[%c0_16, %c1280] : memref<2x3072xf32, #tpu.memory_space<vmem>>, vector<2x256xf32>
    %57 = vector.broadcast %55 : vector<2x1xf32> to vector<2x256xf32>
    %58 = arith.mulf %57, %56 : vector<2x256xf32>
    %59 = arith.addf %54, %58 : vector<2x256xf32>
    %60 = vector.extract_strided_slice %6 {offsets = [0, 7], sizes = [2, 1], strides = [1, 1]} : vector<2x12xf32> to vector<2x1xf32>
    %c0_17 = arith.constant 0 : index
    %c1792 = arith.constant 1792 : index
    %61 = vector.load %arg3[%c0_17, %c1792] : memref<2x3072xf32, #tpu.memory_space<vmem>>, vector<2x256xf32>
    %62 = vector.broadcast %60 : vector<2x1xf32> to vector<2x256xf32>
    %63 = arith.mulf %62, %61 : vector<2x256xf32>
    %64 = arith.addf %59, %63 : vector<2x256xf32>
    %65 = vector.extract_strided_slice %6 {offsets = [0, 9], sizes = [2, 1], strides = [1, 1]} : vector<2x12xf32> to vector<2x1xf32>
    %c0_18 = arith.constant 0 : index
    %c2304 = arith.constant 2304 : index
    %66 = vector.load %arg3[%c0_18, %c2304] : memref<2x3072xf32, #tpu.memory_space<vmem>>, vector<2x256xf32>
    %67 = vector.broadcast %65 : vector<2x1xf32> to vector<2x256xf32>
    %68 = arith.mulf %67, %66 : vector<2x256xf32>
    %69 = arith.addf %64, %68 : vector<2x256xf32>
    %70 = vector.extract_strided_slice %6 {offsets = [0, 11], sizes = [2, 1], strides = [1, 1]} : vector<2x12xf32> to vector<2x1xf32>
    %c0_19 = arith.constant 0 : index
    %c2816 = arith.constant 2816 : index
    %71 = vector.load %arg3[%c0_19, %c2816] : memref<2x3072xf32, #tpu.memory_space<vmem>>, vector<2x256xf32>
    %72 = vector.broadcast %70 : vector<2x1xf32> to vector<2x256xf32>
    %73 = arith.mulf %72, %71 : vector<2x256xf32>
    %74 = arith.addf %69, %73 : vector<2x256xf32>
    %c0_20 = arith.constant 0 : index
    %c256_21 = arith.constant 256 : index
    %75 = vector.load %arg2[%c0_20, %c256_21] : memref<1x512xf32, #tpu.memory_space<vmem>>, vector<1x256xf32>
    %76 = vector.broadcast %75 : vector<1x256xf32> to vector<2x256xf32>
    %77 = arith.addf %74, %76 : vector<2x256xf32>
    %cst_22 = arith.constant 9.99999997E-7 : f32
    %78 = vector.broadcast %cst_22 : f32 to vector<2x256xf32>
    %79 = arith.maximumf %77, %78 : vector<2x256xf32>
    %c0_23 = arith.constant 0 : index
    %c256_24 = arith.constant 256 : index
    %80 = vector.load %arg4[%c0_23, %c256_24] : memref<2x512xf32, #tpu.memory_space<vmem>>, vector<2x256xf32>
    tpu.vector_store %arg4[%c0_23, %c256_24], %79 {strides = array<i32>} : memref<2x512xf32, #tpu.memory_space<vmem>>, vector<2x256xf32>,
    return
  }
  func.func @transform_0(%arg0: i32) -> (i32, i32) {
    %c0_i32 = arith.constant 0 : i32
    %c0_i32_0 = arith.constant 0 : i32
    %c0_i32_1 = arith.constant 0 : i32
    return %c0_i32, %c0_i32_0 : i32, i32
  }
  func.func @transform_1(%arg0: i32) -> (i32, i32) {
    %c0_i32 = arith.constant 0 : i32
    %c0_i32_0 = arith.constant 0 : i32
    %c0_i32_1 = arith.constant 0 : i32
    return %c0_i32, %c0_i32_0 : i32, i32
  }
  func.func @transform_2(%arg0: i32) -> (i32, i32) {
    %c0_i32 = arith.constant 0 : i32
    %c0_i32_0 = arith.constant 0 : i32
    return %arg0, %c0_i32 : i32, i32
  }
  func.func @transform_3(%arg0: i32) -> (i32, i32) {
    %c0_i32 = arith.constant 0 : i32
    %c0_i32_0 = arith.constant 0 : i32
    return %arg0, %c0_i32 : i32, i32
  }
}

</mosaic_0001>

<bundles_post_ra>
// kernel: tpu_custom_call.1
= control target key start
LH: loop header
LB: loop body
LE: loop exit
PB: predicated region body
PF: predicated region fallthrough
CT: control target
= control target key end

     0   :  { %8 = vsyncpa [#allocation3], 0  ;;  %s547_s0 = inlined_call_operand.hbm [shape: f32[2,12], index: 0, kind: input, shape index: {}]   ;;  %s548_s1 = inlined_call_operand.hbm [shape: f32[1,512], index: 1, kind: input, shape index: {}]   ;;  %s549_s2 = inlined_call_operand.hbm [shape: f32[2,3072], index: 2, kind: input, shape index: {}]   ;;  %s550_s3 = inlined_call_operand.hbm [shape: f32[2,512], index: 3, kind: output, shape index: {}]  }
   0x1   :  { %9 = vsyncpa [#allocation6], 0 }
   0x2   :  { %10 = vsyncpa [#allocation4], 0  ;;  %s499_s12 = smov [#allocation5]   ;;  %s500_s14 = smov [#allocation2]  }
   0x3   :  { %s27_s13 = sshll.u32 %s499_s12, 4  ;;  %s17_s15 = sshll.u32 %s500_s14, 4  ;;  %s28_s13 = int_to_ptr.vmem [resolvable:$true] %s27_s13  ;;  %s18_s15 = int_to_ptr.vmem [resolvable:$true] %s17_s15 }
   0x4   :  { %s421_s16 = scalar_lea.vmem %s28_s13, 64  ;;  %p426_p1 = scmp.lt.s32.totalorder %s28_s13, %s28_s13 }
   0x5   :  { %p422_p0 = scmp.ne.s32.totalorder %s28_s13, %s421_s16  ;;  %p427_p2 = scmp.lt.s32.totalorder %s421_s16, %s421_s16 }
   0x7   :  { %p428_p3 = por %p427_p2, %p426_p1 }
   0x9   :  { %p429_p4 = pnand %p428_p3, %p422_p0 }
   0xb   :  { %432 = shalt.err (!%p429_p4)
}
   0xc   :  { %30 = dma.hbm_to_vmem [thread:$0]  %s548_s1, 64, %s28_s13, [#allocation6]  }
   0xd   :  { %s441_s19 = scalar_lea.vmem %s18_s15, 32  ;;  %p446_p6 = scmp.lt.s32.totalorder %s18_s15, %s18_s15 }
   0xe   :  { %p442_p5 = scmp.ne.s32.totalorder %s18_s15, %s441_s19  ;;  %p447_p7 = scmp.lt.s32.totalorder %s441_s19, %s441_s19 }
  0x10   :  { %p448_p8 = por %p447_p7, %p446_p6 }
  0x12   :  { %p449_p9 = pnand %p448_p8, %p442_p5 }
  0x14   :  { %452 = shalt.err (!%p449_p9)
}
  0x15   :  { %20 = dma.hbm_to_vmem [thread:$0]  %s547_s0, 32, %s18_s15, [#allocation3]  }
  0x16   :  { %s501_s22 = smov [#allocation7]  }
  0x17   :  { %s37_s23 = sshll.u32 %s501_s22, 4  ;;  %s38_s23 = int_to_ptr.vmem [resolvable:$true] %s37_s23 }
  0x18   :  { %s461_s24 = scalar_lea.vmem %s38_s23, 768  ;;  %p466_p11 = scmp.lt.s32.totalorder %s38_s23, %s38_s23 }
  0x19   :  { %p462_p10 = scmp.ne.s32.totalorder %s38_s23, %s461_s24  ;;  %p467_p12 = scmp.lt.s32.totalorder %s461_s24, %s461_s24 }
  0x1b   :  { %p468_p13 = por %p467_p12, %p466_p11 }
  0x1d   :  { %p469_p0 = pnand %p468_p13, %p462_p10 }
  0x1f   :  { %472 = shalt.err (!%p469_p0)
}
  0x20   :  { %40 = dma.hbm_to_vmem [thread:$0]  %s549_s2, 768, %s38_s23, [#allocation6]  }
  0x21   :  { %493 = dma.done.wait [#allocation3], 32  }
  0x22   :  { %494 = vsyncadd [#allocation3], 4294967264 }
  0x23   :  { %495 = dma.done.wait [#allocation6], 832  }
  0x24   :  { %496 = vsyncadd [#allocation6], 4294966464  ;;  %v502_v0 = vmov 1   ;;  %v503_v1 = vmov 0   ;;  %v52_v2 = vld [vmem:[#allocation2] sm:$0x3]  ;;  %v179_v35 = vlaneseq }
  0x25   :  { %401 = vset.pattern.permute.xlu1 %v502_v0  ;;  %399 = vset.pattern.permute.xlu0 %v503_v1  ;;  %v53_v3 = vmul.f32 1.442695, %v52_v2  ;;  %v504_v6 = vmov 3   ;;  %v505_v7 = vmov 2   ;;  %v506_v8 = vmov 4   ;;  %s514_s0 = smov [#allocation8]  }
  0x26   :  { %v507_v9 = vmov 5   ;;  %v508_v10 = vmov 6   ;;  %v509_v11 = vmov 8   ;;  %v510_v12 = vmov 7   ;;  %s359_s2 = sshll.u32 %s514_s0, 4  ;;  %s360_s2 = int_to_ptr.vmem [resolvable:$true] %s359_s2 }
  0x27   :  { %411 = vpow2.f32 %v53_v3  ;;  %v511_v13 = vmov 11   ;;  %v512_v14 = vmov 9   ;;  %v513_v15 = vmov 10   ;;  %s473_s26 = scalar_lea.vmem %s360_s2, 128  ;;  %p478_p2 = scmp.lt.s32.totalorder %s360_s2, %s360_s2 }
  0x28   :  { %v369_v20 = vld.sshfl [vmem:[#allocation7] sm:$0x33 pattern:$0x76325410]  ;;  %v180_v50 = vshrl.u32 %v179_v35, 7  ;;  %p474_p1 = scmp.ne.s32.totalorder %s360_s2, %s473_s26  ;;  %p479_p3 = scmp.lt.s32.totalorder %s473_s26, %s473_s26 }
  0x29   :  { %v370_v21 = vld.sshfl [vmem:[#allocation7 + $0x8] sm:$0x33 pattern:$0x76325410]  ;;  %v70_v26 = vcombine.high %v369_v20, %v369_v20 }
  0x2a   :  { %v376_v23 = vld.sshfl [vmem:[#allocation7 + $0x4] sm:$0x33 pattern:$0x76325410]  ;;  %v90_v27 = vcombine.high %v370_v21, %v370_v21  ;;  %p480_p4 = por %p479_p3, %p478_p2 }
  0x2b   :  { %v377_v24 = vld.sshfl [vmem:[#allocation7 + $0xc] sm:$0x33 pattern:$0x76325410]  ;;  %v218_v36 = vcombine.high %v376_v23, %v376_v23 }
  0x2c   :  { %v371_v25 = vld.sshfl [vmem:[#allocation7 + $0x10] sm:$0x33 pattern:$0x76325410]  ;;  %v238_v29 = vcombine.high %v377_v24, %v377_v24  ;;  %p481_p5 = pnand %p480_p4, %p474_p1 }
  0x2d   :  { %v378_v28 = vld.sshfl [vmem:[#allocation7 + $0x14] sm:$0x33 pattern:$0x76325410]  ;;  %v110_v37 = vcombine.high %v371_v25, %v371_v25 }
  0x2e   :  { %v372_v31 = vld.sshfl [vmem:[#allocation7 + $0x18] sm:$0x33 pattern:$0x76325410]  ;;  %v258_v38 = vcombine.high %v378_v28, %v378_v28 }
  0x2f   :  { %v379_v32 = vld.sshfl [vmem:[#allocation7 + $0x1c] sm:$0x33 pattern:$0x76325410]  ;;  %v130_v48 = vcombine.high %v372_v31, %v372_v31 }
  0x30   :  { %v380_v34 = vld.sshfl [vmem:[#allocation7 + $0x24] sm:$0x33 pattern:$0x76325410]  ;;  %v278_v47 = vcombine.high %v379_v32, %v379_v32 }
  0x31   :  { %v381_v39 = vld.sshfl [vmem:[#allocation7 + $0x2c] sm:$0x33 pattern:$0x76325410]  ;;  %v298_v49 = vcombine.high %v380_v34, %v380_v34 }
  0x32   :  { %v318_v51 = vcombine.high %v381_v39, %v381_v39  ;;  %v373_v56 = vld.sshfl [vmem:[#allocation7 + $0x20] sm:$0x33 pattern:$0x76325410] }
  0x33   :  { %v374_v62 = vld.sshfl [vmem:[#allocation7 + $0x28] sm:$0x33 pattern:$0x76325410] }
  0x34   :  { %v412_v4 = vpop.eup %411 }
  0x35   :  { %v55_v5 = vadd.f32 0.001, %v412_v4 }
  0x37   :  { %207 = vperm.xlu1 %401, %v55_v5   ;;  %59 = vperm.xlu0 %399, %v55_v5  }
  0x3b   :  { %402 = vset.pattern.permute.xlu1 %v504_v6  ;;  %400 = vset.pattern.permute.xlu0 %v505_v7  ;;  %v150_v6 = vcombine.high %v373_v56, %v373_v56  ;;  %v181_v7 = vsub.s32 0, %v180_v50 }
  0x3c   :  { %227 = vperm.xlu1 %402, %v55_v5   ;;  %79 = vperm.xlu0 %400, %v55_v5  }
  0x40   :  { %403 = vset.pattern.permute.xlu1 %v506_v8  ;;  %404 = vset.pattern.permute.xlu0 %v507_v9 }
  0x41   :  { %99 = vperm.xlu1 %403, %v55_v5   ;;  %247 = vperm.xlu0 %404, %v55_v5  }
  0x45   :  { %405 = vset.pattern.permute.xlu1 %v508_v10  ;;  %407 = vset.pattern.permute.xlu0 %v509_v11  ;;  %v185_v10 = vsub.s32 1, %v180_v50  ;;  %v170_v11 = vcombine.high %v374_v62, %v374_v62 }
  0x46   :  { %119 = vperm.xlu1 %405, %v55_v5   ;;  %139 = vperm.xlu0 %407, %v55_v5  }
  0x4a   :  { %406 = vset.pattern.permute.xlu1 %v510_v12  ;;  %410 = vset.pattern.permute.xlu0 %v511_v13 }
  0x4b   :  { %267 = vperm.xlu1 %406, %v55_v5   ;;  %307 = vperm.xlu0 %410, %v55_v5  }
  0x4f   :  { %408 = vset.pattern.permute.xlu1 %v512_v14 }
  0x50   :  { %287 = vperm.xlu1 %408, %v55_v5  }
  0x54   :  { %409 = vset.pattern.permute.xlu1 %v513_v15  ;;  %v325_v15 = vld [vmem:[#allocation5 + $0x2] sm:$0x3] }
  0x55   :  { %159 = vperm.xlu1 %409, %v55_v5  }
  0xb2   :  { %v208_v16 = vpop.permute.xlu1 %207  ;;  %v60_v17 = vpop.permute.xlu0 %59 }
  0xb3   :  { %v73_v40 = vmul.f32 %v369_v20, %v60_v17  ;;  %v74_v41 = vmul.f32 %v70_v26, %v60_v17  ;;  %v221_v52 = vmul.f32 %v376_v23, %v208_v16  ;;  %v222_v53 = vmul.f32 %v218_v36, %v208_v16  ;;  %v177_v26 = vld [vmem:[#allocation5] sm:$0x3] }
  0xb4   :  { %v186_v35 = vrot.slane %v177_v26, %v185_v10 }
  0xb7   :  { %v228_v18 = vpop.permute.xlu1 %227  ;;  %v80_v19 = vpop.permute.xlu0 %79 }
  0xb8   :  { %v93_v42 = vmul.f32 %v370_v21, %v80_v19  ;;  %v94_v43 = vmul.f32 %v90_v27, %v80_v19  ;;  %v241_v44 = vmul.f32 %v377_v24, %v228_v18  ;;  %v242_v45 = vmul.f32 %v238_v29, %v228_v18 }
  0xb9   :  { %v330_v29 = vrot.slane %v325_v15, %v181_v7 }
  0xba   :  { %v95_v58 = vadd.f32 %v93_v42, %v73_v40  ;;  %v96_v59 = vadd.f32 %v94_v43, %v74_v41  ;;  %v243_v63 = vadd.f32 %v241_v44, %v221_v52  ;;  %v244_v0 = vadd.f32 %v242_v45, %v222_v53 }
  0xbc   :  { %v100_v22 = vpop.permute.xlu1 %99  ;;  %v248_v30 = vpop.permute.xlu0 %247 }
  0xbd   :  { %v261_v54 = vmul.f32 %v378_v28, %v248_v30  ;;  %v262_v55 = vmul.f32 %v258_v38, %v248_v30  ;;  %v113_v60 = vmul.f32 %v371_v25, %v100_v22  ;;  %v114_v61 = vmul.f32 %v110_v37, %v100_v22 }
  0xbe   :  { %v334_v30 = vrot.slane %v325_v15, %v185_v10 }
  0xbf   :  { %v263_v8 = vadd.f32 %v261_v54, %v243_v63  ;;  %v264_v9 = vadd.f32 %v262_v55, %v244_v0  ;;  %v115_v12 = vadd.f32 %v113_v60, %v95_v58  ;;  %v116_v13 = vadd.f32 %v114_v61, %v96_v59 }
  0xc1   :  { %v120_v33 = vpop.permute.xlu1 %119  ;;  %v140_v46 = vpop.permute.xlu0 %139 }
  0xc2   :  { %v133_v4 = vmul.f32 %v372_v31, %v120_v33  ;;  %v134_v5 = vmul.f32 %v130_v48, %v120_v33  ;;  %v153_v24 = vmul.f32 %v373_v56, %v140_v46  ;;  %v154_v25 = vmul.f32 %v150_v6, %v140_v46 }
  0xc3   :  { %v182_v33 = vrot.slane %v177_v26, %v181_v7 }
  0xc4   :  { %v135_v22 = vadd.f32 %v133_v4, %v115_v12  ;;  %v136_v23 = vadd.f32 %v134_v5, %v116_v13 }
  0xc6   :  { %v268_v57 = vpop.permute.xlu1 %267  ;;  %v308_v3 = vpop.permute.xlu0 %307  ;;  %v155_v37 = vadd.f32 %v153_v24, %v135_v22  ;;  %v156_v38 = vadd.f32 %v154_v25, %v136_v23 }
  0xc7   :  { %v281_v1 = vmul.f32 %v379_v32, %v268_v57  ;;  %v282_v2 = vmul.f32 %v278_v47, %v268_v57  ;;  %v321_v16 = vmul.f32 %v381_v39, %v308_v3  ;;  %v322_v17 = vmul.f32 %v318_v51, %v308_v3 }
  0xc9   :  { %v283_v18 = vadd.f32 %v281_v1, %v263_v8  ;;  %v284_v19 = vadd.f32 %v282_v2, %v264_v9 }
  0xcb   :  { %v288_v14 = vpop.permute.xlu1 %287 }
  0xcc   :  { %v301_v20 = vmul.f32 %v380_v34, %v288_v14  ;;  %v302_v21 = vmul.f32 %v298_v49, %v288_v14 }
  0xce   :  { %v303_v27 = vadd.f32 %v301_v20, %v283_v18  ;;  %v304_v28 = vadd.f32 %v302_v21, %v284_v19 }
  0xd0   :  { %v323_v31 = vadd.f32 %v321_v16, %v303_v27  ;;  %v324_v32 = vadd.f32 %v322_v17, %v304_v28  ;;  %v160_v36 = vpop.permute.xlu1 %159 }
  0xd1   :  { %v173_v39 = vmul.f32 %v374_v62, %v160_v36  ;;  %v174_v40 = vmul.f32 %v170_v11, %v160_v36 }
  0xd2   :  { %v337_v34 = vadd.f32 %v330_v29, %v323_v31  ;;  %v338_v41 = vadd.f32 %v334_v30, %v324_v32 }
  0xd3   :  { %v175_v42 = vadd.f32 %v173_v39, %v155_v37  ;;  %v176_v43 = vadd.f32 %v174_v40, %v156_v38 }
  0xd4   :  { %v339_v44 = vmax.f32 %v337_v34, 1e-06  ;;  %v340_v45 = vmax.f32 %v338_v41, 1e-06 }
  0xd5   :  { %v189_v46 = vadd.f32 %v182_v33, %v175_v42  ;;  %v190_v47 = vadd.f32 %v186_v35, %v176_v43 }
  0xd6   :  { %v343_v48 = vcombine.low %v339_v44, %v340_v45 }
  0xd7   :  { %v191_v49 = vmax.f32 %v189_v46, 1e-06  ;;  %v192_v50 = vmax.f32 %v190_v47, 1e-06 }
  0xd8   :  { %382 = vst.sshfl [vmem:[#allocation8 + $0x4] sm:$0x33 pattern:$0x76325410] %v343_v48 }
  0xd9   :  { %v195_v51 = vcombine.low %v191_v49, %v192_v50 }
  0xdb   :  { %375 = vst.sshfl [vmem:[#allocation8] sm:$0x33 pattern:$0x76325410] %v195_v51 }
  0xdc   :  { %484 = shalt.err (!%p481_p5)
}
  0xdd   :  { %362 = dma.vmem_to_hbm [thread:$0]  %s360_s2, 128, %s550_s3, [#allocation4]  }
  0xde   :  { %497 = dma.done.wait [#allocation4], 128  }
  0xdf   :  { %498 = vsyncadd [#allocation4], 4294967168 }
  0xe0   :  { %366 = vsyncpa [#allocation3], 1 }
  0xe1   :  { %367 = vsyncpa [#allocation6], 1 }
  0xe2   :  { %368 = vsyncpa [#allocation4], 1 }

</bundles_post_ra>
